<compile_context>
chip_gen: v6e
topology: v6e:2x2x1
jax: 0.10.0
libtpu: 0.0.40
codegen_flags: <defaults>
</compile_context>

<pallas_src>
import functools

import jax
import jax.numpy as jnp
import numpy as np
from jax import lax
from jax.experimental import pallas as pl
from jax.experimental.pallas import tpu as pltpu


# dimension_numbers for `x @ W.T` with torch-layout W ([out, in]):
# contract x's axis 1 with W's axis 1 (MXU consumes the transposed operand
# natively -- no materialized transpose).
_DN_XWT = (((1,), (1,)), ((), ()))


def _qkv_proj_kernel(x_ref, wq_ref, bq_ref, wk_ref, bk_ref, wv_ref, bv_ref,
                     k_cache_ref, v_cache_ref, q_hm_ref, k_hm_ref, v_hm_ref,
                     *, n_head, d_k, scale):
    """Fused QKV projection (bf16 MXU operands, f32 accumulation).

    Emits the (k, v) cache in the module's f32 [B, S, D] layout (lane-dense
    D-wide stores) plus bf16 head-major [B, H, S, d_k] copies of q/k/v so the
    attention kernel can batch all heads into one MXU contraction with half
    the DMA bytes.  The 1/sqrt(d_k) scale is folded into q here.
    """
    x = x_ref[0]                                             # [TM, D] bf16
    q = (lax.dot_general(x, wq_ref[...], _DN_XWT,
                         preferred_element_type=jnp.float32)
         + bq_ref[...]) * scale                              # scale folded into q
    k = lax.dot_general(x, wk_ref[...], _DN_XWT,
                        preferred_element_type=jnp.float32) + bk_ref[...]
    v = lax.dot_general(x, wv_ref[...], _DN_XWT,
                        preferred_element_type=jnp.float32) + bv_ref[...]

    k_cache_ref[0] = k                                       # lane-dense [TM, D] f32
    v_cache_ref[0] = v

    q_bf = q.astype(jnp.bfloat16)
    k_bf = k.astype(jnp.bfloat16)
    v_bf = v.astype(jnp.bfloat16)
    for h in range(n_head):                                  # static unroll, small H
        lo = h * d_k
        q_hm_ref[0, h] = q_bf[:, lo:lo + d_k]
        k_hm_ref[0, h] = k_bf[:, lo:lo + d_k]
        v_hm_ref[0, h] = v_bf[:, lo:lo + d_k]


def _flash_attn_out_kernel(q_ref, k_ref, v_ref, mask_ref, wo_ref, bo_ref, o_ref,
                           m_scr, l_scr, acc_scr, *, n_head, d_k):
    """Flash-style attention (heads batched on the MXU) + fused output proj.

    Main loop: bf16 score matmul / bf16 p@v with f32 accumulation and f32
    online-softmax stats.  Epilogue (ki == last): normalize, then contract the
    per-head outputs against wo (pre-reshaped to [H, d_k, D] bf16) and add bo,
    producing one lane-dense [TQ, D] f32 store -- no per-head lane slicing and
    no separate output-projection kernel / HBM round trip.
    """
    ki = pl.program_id(2)

    @pl.when(ki == 0)
    def _():
        m_scr[...] = jnp.full(m_scr.shape, -jnp.inf, m_scr.dtype)
        l_scr[...] = jnp.zeros(l_scr.shape, l_scr.dtype)
        acc_scr[...] = jnp.zeros(acc_scr.shape, acc_scr.dtype)

    q = q_ref[0]                                             # [H, TQ, d_k] bf16 (pre-scaled)
    k = k_ref[0]                                             # [H, TK, d_k] bf16
    v = v_ref[0]                                             # [H, TK, d_k] bf16

    # scores[h, q, k] = sum_d q[h, q, d] * k[h, k, d] -- one batched MXU call.
    s = lax.dot_general(q, k, (((2,), (2,)), ((0,), (0,))),
                        preferred_element_type=jnp.float32)   # [H, TQ, TK] f32
    s = s + mask_ref[...].astype(jnp.float32)                 # (TQ, TK) bf16 mask, bcast over H

    m_prev = m_scr[...]                                       # [H, TQ, 1] f32
    m_new = jnp.maximum(m_prev, jnp.max(s, axis=-1, keepdims=True))
    alpha = jnp.exp(m_prev - m_new)
    p = jnp.exp(s - m_new)                                    # [H, TQ, TK] f32

    l_scr[...] = alpha * l_scr[...] + jnp.sum(p, axis=-1, keepdims=True)
    acc_scr[...] = alpha * acc_scr[...] + lax.dot_general(
        p.astype(jnp.bfloat16), v, (((2,), (1,)), ((0,), (0,))),
        preferred_element_type=jnp.float32)                   # [H, TQ, d_k] f32
    m_scr[...] = m_new

    @pl.when(ki == pl.num_programs(2) - 1)
    def _():
        inv_l = pl.reciprocal(l_scr[...], approx=True)        # [H, TQ, 1]
        o = (acc_scr[...] * inv_l).astype(jnp.bfloat16)       # [H, TQ, d_k]
        # Fused output projection: out[q, :] = sum_h o[h] @ wo[h] + bo.
        out = lax.dot_general(o[0], wo_ref[0], (((1,), (0,)), ((), ())),
                              preferred_element_type=jnp.float32) + bo_ref[...]
        for h in range(1, n_head):                            # static unroll, small H
            out = out + lax.dot_general(o[h], wo_ref[h], (((1,), (0,)), ((), ())),
                                        preferred_element_type=jnp.float32)
        o_ref[0] = out                                        # lane-dense [TQ, D] store


def mha_forward(x, params, mask, n_head, *,
                tq=256, tk=256, tm=256,
                vmem_limit_bytes=48 * 1024 * 1024):
    """x: [B, S, D] f32; mask: 2-D additive attention mask (>= [S, S]).

    Returns (out [B, S, D] f32, (k_cache, v_cache) each [B, S, D] f32),
    matching MHA.forward(x, mask, past_kv=None).

    Tiles / VMEM defaults are v7x-safe; on v5e/v6e (128 MiB VMEM) sweep
    tq=tk=512 and vmem_limit_bytes ~96 MiB.  On v7x keep TQ and shrink TK
    first if VMEM-constrained (halving TQ doubles K/V HBM re-reads).
    """
    # TODO(synk): past_kv concatenation path not implemented (past_kv=None only).
    B, S, D = x.shape
    assert D % n_head == 0
    d_k = D // n_head
    scale = float(1.0 / d_k ** 0.5)
    wq, bq, wk, bk, wv, bv, wo, bo = params                   # torch layout [out, in]

    # Module: _mask = mask[S_kv - S_x : S_kv, :S_kv]; with past_kv=None both are S.
    assert mask.ndim == 2 and mask.shape[0] >= S and mask.shape[1] >= S, (
        "only 2-D [S, S] additive masks are supported")
    bf16, f32 = jnp.bfloat16, jnp.float32
    mask_sl = mask[:S, :S].astype(bf16)                       # bf16 stream (halves B*S^2 bytes)

    x_bf = x.astype(bf16)
    wq_bf, wk_bf, wv_bf = (w.astype(bf16) for w in (wq, wk, wv))
    bq2, bk2, bv2 = (b.reshape(1, D).astype(f32) for b in (bq, bk, bv))
    # wo.T reshaped to [H, d_k, D]: woT[h, d, o] == wo[o, h*d_k + d]  (head merge
    # folded into the fused output projection; no lane-dim concatenate anywhere).
    woT_bf = wo.T.reshape(n_head, d_k, D).astype(bf16)
    bo2 = bo.reshape(1, D).astype(f32)

    def cparams(sem):
        return pltpu.CompilerParams(dimension_semantics=sem,
                                    vmem_limit_bytes=vmem_limit_bytes)

    # Tile sizes.  At toy shapes the tiles degrade to the full dims (satisfies
    # the (8, 128)/(16, 128) block rule via the full-dim clause).
    TQ = min(S, tq)
    TK = min(S, tk)
    TM = min(S, tm)
    # TODO(synk): ragged-tail handling (pl.cdiv grid + masked last tile) for S
    # not a multiple of the tile size.
    assert S % TQ == 0 and S % TK == 0 and S % TM == 0

    # --- kernel 1: fused QKV projection + bf16 head-major relayout ----------
    qkv = functools.partial(_qkv_proj_kernel, n_head=n_head, d_k=d_k, scale=scale)
    k_cache, v_cache, q_hm, k_hm, v_hm = pl.pallas_call(
        qkv,
        out_shape=(jax.ShapeDtypeStruct((B, S, D), f32),
                   jax.ShapeDtypeStruct((B, S, D), f32),
                   jax.ShapeDtypeStruct((B, n_head, S, d_k), bf16),
                   jax.ShapeDtypeStruct((B, n_head, S, d_k), bf16),
                   jax.ShapeDtypeStruct((B, n_head, S, d_k), bf16)),
        grid_spec=pltpu.PrefetchScalarGridSpec(
            num_scalar_prefetch=0,
            grid=(B, S // TM),
            in_specs=[pl.BlockSpec((1, TM, D), lambda b, i: (b, i, 0)),
                      pl.BlockSpec((D, D), lambda b, i: (0, 0)),
                      pl.BlockSpec((1, D), lambda b, i: (0, 0)),
                      pl.BlockSpec((D, D), lambda b, i: (0, 0)),
                      pl.BlockSpec((1, D), lambda b, i: (0, 0)),
                      pl.BlockSpec((D, D), lambda b, i: (0, 0)),
                      pl.BlockSpec((1, D), lambda b, i: (0, 0))],
            out_specs=[pl.BlockSpec((1, TM, D), lambda b, i: (b, i, 0)),
                       pl.BlockSpec((1, TM, D), lambda b, i: (b, i, 0)),
                       pl.BlockSpec((1, n_head, TM, d_k), lambda b, i: (b, 0, i, 0)),
                       pl.BlockSpec((1, n_head, TM, d_k), lambda b, i: (b, 0, i, 0)),
                       pl.BlockSpec((1, n_head, TM, d_k), lambda b, i: (b, 0, i, 0))]),
        compiler_params=cparams(("parallel", "parallel")),
    )(x_bf, wq_bf, bq2, wk_bf, bk2, wv_bf, bv2)

    # --- kernel 2: flash attention (online softmax) + fused output proj -----
    attn_kernel = functools.partial(_flash_attn_out_kernel, n_head=n_head, d_k=d_k)
    out = pl.pallas_call(
        attn_kernel,
        out_shape=jax.ShapeDtypeStruct((B, S, D), f32),
        grid_spec=pltpu.PrefetchScalarGridSpec(
            num_scalar_prefetch=0,
            grid=(B, S // TQ, S // TK),
            in_specs=[pl.BlockSpec((1, n_head, TQ, d_k), lambda b, qi, ki: (b, 0, qi, 0)),
                      pl.BlockSpec((1, n_head, TK, d_k), lambda b, qi, ki: (b, 0, ki, 0)),
                      pl.BlockSpec((1, n_head, TK, d_k), lambda b, qi, ki: (b, 0, ki, 0)),
                      pl.BlockSpec((TQ, TK), lambda b, qi, ki: (qi, ki)),
                      pl.BlockSpec((n_head, d_k, D), lambda b, qi, ki: (0, 0, 0)),
                      pl.BlockSpec((1, D), lambda b, qi, ki: (0, 0))],
            out_specs=pl.BlockSpec((1, TQ, D), lambda b, qi, ki: (b, qi, 0)),
            scratch_shapes=[pltpu.VMEM((n_head, TQ, 1), f32),
                            pltpu.VMEM((n_head, TQ, 1), f32),
                            pltpu.VMEM((n_head, TQ, d_k), f32)]),
        compiler_params=cparams(("parallel", "parallel", "arbitrary")),
    )(q_hm, k_hm, v_hm, mask_sl, woT_bf, bo2)

    return out, (k_cache, v_cache)


def mha_reference(x, params, mask, n_head):
    """Pure-JAX f32 reference mirroring the PyTorch forward exactly."""
    B, S, D = x.shape
    d_k = D // n_head
    scale = 1.0 / (d_k ** 0.5)
    wq, bq, wk, bk, wv, bv, wo, bo = params
    q = x @ wq.T + bq
    k = x @ wk.T + bk
    v = x @ wv.T + bv

    def split_heads(a):
        return a.reshape(B, S, n_head, d_k).transpose(0, 2, 1, 3)

    qh, kh, vh = split_heads(q), split_heads(k), split_heads(v)
    scores = jnp.einsum('bhqd,bhkd->bhqk', qh, kh) * scale
    scores = scores + mask[:S, :S][None, None, :, :]
    weights = jax.nn.softmax(scores, axis=-1)
    out = jnp.einsum('bhqk,bhkd->bhqd', weights, vh)
    out = out.transpose(0, 2, 1, 3).reshape(B, S, D)
    out = out @ wo.T + bo
    return out, (k, v)


if __name__ == "__main__":
    B, S, D, H = 2, 8, 32, 4

    key = jax.random.PRNGKey(0)
    keys = jax.random.split(key, 10)
    # Deterministic synthetic parameters (torch nn.Linear stores W as [out, in]).
    wq = jax.random.normal(keys[0], (D, D), jnp.float32) * 0.1
    bq = jax.random.normal(keys[1], (D,), jnp.float32) * 0.1
    wk = jax.random.normal(keys[2], (D, D), jnp.float32) * 0.1
    bk = jax.random.normal(keys[3], (D,), jnp.float32) * 0.1
    wv = jax.random.normal(keys[4], (D, D), jnp.float32) * 0.1
    bv = jax.random.normal(keys[5], (D,), jnp.float32) * 0.1
    wo = jax.random.normal(keys[6], (D, D), jnp.float32) * 0.1
    bo = jax.random.normal(keys[7], (D,), jnp.float32) * 0.1
    params = (wq, bq, wk, bk, wv, bv, wo, bo)

    x = jax.random.normal(keys[8], (B, S, D), jnp.float32)

    # Additive causal mask (0 on allowed positions, large negative elsewhere).
    causal = jnp.tril(jnp.ones((S, S), jnp.bool_))
    mask = jnp.where(causal, 0.0, -1e9).astype(jnp.float32)

    out, (k_cache, v_cache) = mha_forward(x, params, mask, H)
    jax.block_until_ready(out)
    jax.block_until_ready(k_cache)
    jax.block_until_ready(v_cache)

    ref_out, (ref_k, ref_v) = mha_reference(x, params, mask, H)
    # bf16 MXU operands (f32 accumulation): tolerance intentionally ~1e-2.
    np.testing.assert_allclose(np.asarray(out), np.asarray(ref_out),
                               rtol=2e-2, atol=2e-2)
    np.testing.assert_allclose(np.asarray(k_cache), np.asarray(ref_k),
                               rtol=2e-2, atol=2e-2)
    np.testing.assert_allclose(np.asarray(v_cache), np.asarray(ref_v),
                               rtol=2e-2, atol=2e-2)
    print("KERNEL_OK")
</pallas_src>

<mosaic_0001>
module attributes {stable_mosaic.version = 11 : i64} {
  func.func @_qkv_proj_kernel(%arg0: i32, %arg1: i32, %arg2: memref<1x8x32xbf16, #tpu.memory_space<vmem>>, %arg3: memref<32x32xbf16, #tpu.memory_space<vmem>>, %arg4: memref<1x32xf32, #tpu.memory_space<vmem>>, %arg5: memref<32x32xbf16, #tpu.memory_space<vmem>>, %arg6: memref<1x32xf32, #tpu.memory_space<vmem>>, %arg7: memref<32x32xbf16, #tpu.memory_space<vmem>>, %arg8: memref<1x32xf32, #tpu.memory_space<vmem>>, %arg9: memref<1x8x32xf32, #tpu.memory_space<vmem>>, %arg10: memref<1x8x32xf32, #tpu.memory_space<vmem>>, %arg11: memref<1x4x8x8xbf16, #tpu.memory_space<vmem>>, %arg12: memref<1x4x8x8xbf16, #tpu.memory_space<vmem>>, %arg13: memref<1x4x8x8xbf16, #tpu.memory_space<vmem>>) attributes {dimension_semantics = [#tpu.dimension_semantics<parallel>, #tpu.dimension_semantics<parallel>], iteration_bounds = array<i64: 2, 1>, scalar_prefetch = 0 : i64, scratch_operands = 0 : i64, tpu.core_type = #tpu.core_type<tc>, window_params = [{transform_indices = @transform_0, window_bounds = array<i64: 1, 8, 32>}, {pipeline_mode = #tpu.pipeline_mode<synchronous>, transform_indices = @transform_1, window_bounds = array<i64: 32, 32>}, {pipeline_mode = #tpu.pipeline_mode<synchronous>, transform_indices = @transform_2, window_bounds = array<i64: 1, 32>}, {pipeline_mode = #tpu.pipeline_mode<synchronous>, transform_indices = @transform_3, window_bounds = array<i64: 32, 32>}, {pipeline_mode = #tpu.pipeline_mode<synchronous>, transform_indices = @transform_4, window_bounds = array<i64: 1, 32>}, {pipeline_mode = #tpu.pipeline_mode<synchronous>, transform_indices = @transform_5, window_bounds = array<i64: 32, 32>}, {pipeline_mode = #tpu.pipeline_mode<synchronous>, transform_indices = @transform_6, window_bounds = array<i64: 1, 32>}, {transform_indices = @transform_7, window_bounds = array<i64: 1, 8, 32>}, {transform_indices = @transform_8, window_bounds = array<i64: 1, 8, 32>}, {transform_indices = @transform_9, window_bounds = array<i64: 1, 4, 8, 8>}, {transform_indices = @transform_10, window_bounds = array<i64: 1, 4, 8, 8>}, {transform_indices = @transform_11, window_bounds = array<i64: 1, 4, 8, 8>}]} {
    %c0 = arith.constant 0 : index
    %c0_0 = arith.constant 0 : index
    %c0_1 = arith.constant 0 : index
    %0 = vector.load %arg2[%c0, %c0_0, %c0_1] : memref<1x8x32xbf16, #tpu.memory_space<vmem>>, vector<1x8x32xbf16>
    %1 = vector.shape_cast %0 : vector<1x8x32xbf16> to vector<8x32xbf16>
    %c0_2 = arith.constant 0 : index
    %c0_3 = arith.constant 0 : index
    %2 = vector.load %arg3[%c0_2, %c0_3] : memref<32x32xbf16, #tpu.memory_space<vmem>>, vector<32x32xbf16>
    %cst = arith.constant dense<0.000000e+00> : vector<8x32xf32>
    %3 = tpu.matmul %1, %2, %cst {dimension_numbers = #tpu.dot_dimension_numbers<[1], [1], [0], [0], [0, 0, 1, 0], [], []>} : vector<8x32xbf16>, vector<32x32xbf16>, vector<8x32xf32> -> vector<8x32xf32>
    %c0_4 = arith.constant 0 : index
    %c0_5 = arith.constant 0 : index
    %4 = vector.load %arg4[%c0_4, %c0_5] : memref<1x32xf32, #tpu.memory_space<vmem>>, vector<1x32xf32>
    %5 = vector.broadcast %4 : vector<1x32xf32> to vector<8x32xf32>
    %6 = arith.addf %3, %5 : vector<8x32xf32>
    %cst_6 = arith.constant 0.353553385 : f32
    %7 = vector.broadcast %cst_6 : f32 to vector<8x32xf32>
    %8 = arith.mulf %6, %7 : vector<8x32xf32>
    %c0_7 = arith.constant 0 : index
    %c0_8 = arith.constant 0 : index
    %9 = vector.load %arg5[%c0_7, %c0_8] : memref<32x32xbf16, #tpu.memory_space<vmem>>, vector<32x32xbf16>
    %cst_9 = arith.constant dense<0.000000e+00> : vector<8x32xf32>
    %10 = tpu.matmul %1, %9, %cst_9 {dimension_numbers = #tpu.dot_dimension_numbers<[1], [1], [0], [0], [0, 0, 1, 0], [], []>} : vector<8x32xbf16>, vector<32x32xbf16>, vector<8x32xf32> -> vector<8x32xf32>
    %c0_10 = arith.constant 0 : index
    %c0_11 = arith.constant 0 : index
    %11 = vector.load %arg6[%c0_10, %c0_11] : memref<1x32xf32, #tpu.memory_space<vmem>>, vector<1x32xf32>
    %12 = vector.broadcast %11 : vector<1x32xf32> to vector<8x32xf32>
    %13 = arith.addf %10, %12 : vector<8x32xf32>
    %c0_12 = arith.constant 0 : index
    %c0_13 = arith.constant 0 : index
    %14 = vector.load %arg7[%c0_12, %c0_13] : memref<32x32xbf16, #tpu.memory_space<vmem>>, vector<32x32xbf16>
    %cst_14 = arith.constant dense<0.000000e+00> : vector<8x32xf32>
    %15 = tpu.matmul %1, %14, %cst_14 {dimension_numbers = #tpu.dot_dimension_numbers<[1], [1], [0], [0], [0, 0, 1, 0], [], []>} : vector<8x32xbf16>, vector<32x32xbf16>, vector<8x32xf32> -> vector<8x32xf32>
    %c0_15 = arith.constant 0 : index
    %c0_16 = arith.constant 0 : index
    %16 = vector.load %arg8[%c0_15, %c0_16] : memref<1x32xf32, #tpu.memory_space<vmem>>, vector<1x32xf32>
    %17 = vector.broadcast %16 : vector<1x32xf32> to vector<8x32xf32>
    %18 = arith.addf %15, %17 : vector<8x32xf32>
    %c0_17 = arith.constant 0 : index
    %c0_18 = arith.constant 0 : index
    %c0_19 = arith.constant 0 : index
    %19 = vector.load %arg9[%c0_17, %c0_18, %c0_19] : memref<1x8x32xf32, #tpu.memory_space<vmem>>, vector<1x8x32xf32>
    %20 = vector.shape_cast %19 : vector<1x8x32xf32> to vector<8x32xf32>
    %21 = vector.shape_cast %13 : vector<8x32xf32> to vector<1x8x32xf32>
    tpu.vector_store %arg9[%c0_17, %c0_18, %c0_19], %21 {strides = array<i32>} : memref<1x8x32xf32, #tpu.memory_space<vmem>>, vector<1x8x32xf32>,
    %c0_20 = arith.constant 0 : index
    %c0_21 = arith.constant 0 : index
    %c0_22 = arith.constant 0 : index
    %22 = vector.load %arg10[%c0_20, %c0_21, %c0_22] : memref<1x8x32xf32, #tpu.memory_space<vmem>>, vector<1x8x32xf32>
    %23 = vector.shape_cast %22 : vector<1x8x32xf32> to vector<8x32xf32>
    %24 = vector.shape_cast %18 : vector<8x32xf32> to vector<1x8x32xf32>
    tpu.vector_store %arg10[%c0_20, %c0_21, %c0_22], %24 {strides = array<i32>} : memref<1x8x32xf32, #tpu.memory_space<vmem>>, vector<1x8x32xf32>,
    %25 = arith.truncf %8 : vector<8x32xf32> to vector<8x32xbf16>
    %26 = arith.truncf %13 : vector<8x32xf32> to vector<8x32xbf16>
    %27 = arith.truncf %18 : vector<8x32xf32> to vector<8x32xbf16>
    %28 = vector.extract_strided_slice %25 {offsets = [0, 0], sizes = [8, 8], strides = [1, 1]} : vector<8x32xbf16> to vector<8x8xbf16>
    %c0_23 = arith.constant 0 : index
    %c0_24 = arith.constant 0 : index
    %c0_25 = arith.constant 0 : index
    %c0_26 = arith.constant 0 : index
    %29 = vector.load %arg11[%c0_23, %c0_24, %c0_25, %c0_26] : memref<1x4x8x8xbf16, #tpu.memory_space<vmem>>, vector<1x1x8x8xbf16>
    %30 = vector.shape_cast %29 : vector<1x1x8x8xbf16> to vector<8x8xbf16>
    %31 = vector.shape_cast %28 : vector<8x8xbf16> to vector<1x1x8x8xbf16>
    tpu.vector_store %arg11[%c0_23, %c0_24, %c0_25, %c0_26], %31 {strides = array<i32>} : memref<1x4x8x8xbf16, #tpu.memory_space<vmem>>, vector<1x1x8x8xbf16>,
    %32 = vector.extract_strided_slice %26 {offsets = [0, 0], sizes = [8, 8], strides = [1, 1]} : vector<8x32xbf16> to vector<8x8xbf16>
    %c0_27 = arith.constant 0 : index
    %c0_28 = arith.constant 0 : index
    %c0_29 = arith.constant 0 : index
    %c0_30 = arith.constant 0 : index
    %33 = vector.load %arg12[%c0_27, %c0_28, %c0_29, %c0_30] : memref<1x4x8x8xbf16, #tpu.memory_space<vmem>>, vector<1x1x8x8xbf16>
    %34 = vector.shape_cast %33 : vector<1x1x8x8xbf16> to vector<8x8xbf16>
    %35 = vector.shape_cast %32 : vector<8x8xbf16> to vector<1x1x8x8xbf16>
    tpu.vector_store %arg12[%c0_27, %c0_28, %c0_29, %c0_30], %35 {strides = array<i32>} : memref<1x4x8x8xbf16, #tpu.memory_space<vmem>>, vector<1x1x8x8xbf16>,
    %36 = vector.extract_strided_slice %27 {offsets = [0, 0], sizes = [8, 8], strides = [1, 1]} : vector<8x32xbf16> to vector<8x8xbf16>
    %c0_31 = arith.constant 0 : index
    %c0_32 = arith.constant 0 : index
    %c0_33 = arith.constant 0 : index
    %c0_34 = arith.constant 0 : index
    %37 = vector.load %arg13[%c0_31, %c0_32, %c0_33, %c0_34] : memref<1x4x8x8xbf16, #tpu.memory_space<vmem>>, vector<1x1x8x8xbf16>
    %38 = vector.shape_cast %37 : vector<1x1x8x8xbf16> to vector<8x8xbf16>
    %39 = vector.shape_cast %36 : vector<8x8xbf16> to vector<1x1x8x8xbf16>
    tpu.vector_store %arg13[%c0_31, %c0_32, %c0_33, %c0_34], %39 {strides = array<i32>} : memref<1x4x8x8xbf16, #tpu.memory_space<vmem>>, vector<1x1x8x8xbf16>,
    %40 = vector.extract_strided_slice %25 {offsets = [0, 8], sizes = [8, 8], strides = [1, 1]} : vector<8x32xbf16> to vector<8x8xbf16>
    %c0_35 = arith.constant 0 : index
    %c1 = arith.constant 1 : index
    %c0_36 = arith.constant 0 : index
    %c0_37 = arith.constant 0 : index
    %41 = vector.load %arg11[%c0_35, %c1, %c0_36, %c0_37] : memref<1x4x8x8xbf16, #tpu.memory_space<vmem>>, vector<1x1x8x8xbf16>
    %42 = vector.shape_cast %41 : vector<1x1x8x8xbf16> to vector<8x8xbf16>
    %43 = vector.shape_cast %40 : vector<8x8xbf16> to vector<1x1x8x8xbf16>
    tpu.vector_store %arg11[%c0_35, %c1, %c0_36, %c0_37], %43 {strides = array<i32>} : memref<1x4x8x8xbf16, #tpu.memory_space<vmem>>, vector<1x1x8x8xbf16>,
    %44 = vector.extract_strided_slice %26 {offsets = [0, 8], sizes = [8, 8], strides = [1, 1]} : vector<8x32xbf16> to vector<8x8xbf16>
    %c0_38 = arith.constant 0 : index
    %c1_39 = arith.constant 1 : index
    %c0_40 = arith.constant 0 : index
    %c0_41 = arith.constant 0 : index
    %45 = vector.load %arg12[%c0_38, %c1_39, %c0_40, %c0_41] : memref<1x4x8x8xbf16, #tpu.memory_space<vmem>>, vector<1x1x8x8xbf16>
    %46 = vector.shape_cast %45 : vector<1x1x8x8xbf16> to vector<8x8xbf16>
    %47 = vector.shape_cast %44 : vector<8x8xbf16> to vector<1x1x8x8xbf16>
    tpu.vector_store %arg12[%c0_38, %c1_39, %c0_40, %c0_41], %47 {strides = array<i32>} : memref<1x4x8x8xbf16, #tpu.memory_space<vmem>>, vector<1x1x8x8xbf16>,
    %48 = vector.extract_strided_slice %27 {offsets = [0, 8], sizes = [8, 8], strides = [1, 1]} : vector<8x32xbf16> to vector<8x8xbf16>
    %c0_42 = arith.constant 0 : index
    %c1_43 = arith.constant 1 : index
    %c0_44 = arith.constant 0 : index
    %c0_45 = arith.constant 0 : index
    %49 = vector.load %arg13[%c0_42, %c1_43, %c0_44, %c0_45] : memref<1x4x8x8xbf16, #tpu.memory_space<vmem>>, vector<1x1x8x8xbf16>
    %50 = vector.shape_cast %49 : vector<1x1x8x8xbf16> to vector<8x8xbf16>
    %51 = vector.shape_cast %48 : vector<8x8xbf16> to vector<1x1x8x8xbf16>
    tpu.vector_store %arg13[%c0_42, %c1_43, %c0_44, %c0_45], %51 {strides = array<i32>} : memref<1x4x8x8xbf16, #tpu.memory_space<vmem>>, vector<1x1x8x8xbf16>,
    %52 = vector.extract_strided_slice %25 {offsets = [0, 16], sizes = [8, 8], strides = [1, 1]} : vector<8x32xbf16> to vector<8x8xbf16>
    %c0_46 = arith.constant 0 : index
    %c2 = arith.constant 2 : index
    %c0_47 = arith.constant 0 : index
    %c0_48 = arith.constant 0 : index
    %53 = vector.load %arg11[%c0_46, %c2, %c0_47, %c0_48] : memref<1x4x8x8xbf16, #tpu.memory_space<vmem>>, vector<1x1x8x8xbf16>
    %54 = vector.shape_cast %53 : vector<1x1x8x8xbf16> to vector<8x8xbf16>
    %55 = vector.shape_cast %52 : vector<8x8xbf16> to vector<1x1x8x8xbf16>
    tpu.vector_store %arg11[%c0_46, %c2, %c0_47, %c0_48], %55 {strides = array<i32>} : memref<1x4x8x8xbf16, #tpu.memory_space<vmem>>, vector<1x1x8x8xbf16>,
    %56 = vector.extract_strided_slice %26 {offsets = [0, 16], sizes = [8, 8], strides = [1, 1]} : vector<8x32xbf16> to vector<8x8xbf16>
    %c0_49 = arith.constant 0 : index
    %c2_50 = arith.constant 2 : index
    %c0_51 = arith.constant 0 : index
    %c0_52 = arith.constant 0 : index
    %57 = vector.load %arg12[%c0_49, %c2_50, %c0_51, %c0_52] : memref<1x4x8x8xbf16, #tpu.memory_space<vmem>>, vector<1x1x8x8xbf16>
    %58 = vector.shape_cast %57 : vector<1x1x8x8xbf16> to vector<8x8xbf16>
    %59 = vector.shape_cast %56 : vector<8x8xbf16> to vector<1x1x8x8xbf16>
    tpu.vector_store %arg12[%c0_49, %c2_50, %c0_51, %c0_52], %59 {strides = array<i32>} : memref<1x4x8x8xbf16, #tpu.memory_space<vmem>>, vector<1x1x8x8xbf16>,
    %60 = vector.extract_strided_slice %27 {offsets = [0, 16], sizes = [8, 8], strides = [1, 1]} : vector<8x32xbf16> to vector<8x8xbf16>
    %c0_53 = arith.constant 0 : index
    %c2_54 = arith.constant 2 : index
    %c0_55 = arith.constant 0 : index
    %c0_56 = arith.constant 0 : index
    %61 = vector.load %arg13[%c0_53, %c2_54, %c0_55, %c0_56] : memref<1x4x8x8xbf16, #tpu.memory_space<vmem>>, vector<1x1x8x8xbf16>
    %62 = vector.shape_cast %61 : vector<1x1x8x8xbf16> to vector<8x8xbf16>
    %63 = vector.shape_cast %60 : vector<8x8xbf16> to vector<1x1x8x8xbf16>
    tpu.vector_store %arg13[%c0_53, %c2_54, %c0_55, %c0_56], %63 {strides = array<i32>} : memref<1x4x8x8xbf16, #tpu.memory_space<vmem>>, vector<1x1x8x8xbf16>,
    %64 = vector.extract_strided_slice %25 {offsets = [0, 24], sizes = [8, 8], strides = [1, 1]} : vector<8x32xbf16> to vector<8x8xbf16>
    %c0_57 = arith.constant 0 : index
    %c3 = arith.constant 3 : index
    %c0_58 = arith.constant 0 : index
    %c0_59 = arith.constant 0 : index
    %65 = vector.load %arg11[%c0_57, %c3, %c0_58, %c0_59] : memref<1x4x8x8xbf16, #tpu.memory_space<vmem>>, vector<1x1x8x8xbf16>
    %66 = vector.shape_cast %65 : vector<1x1x8x8xbf16> to vector<8x8xbf16>
    %67 = vector.shape_cast %64 : vector<8x8xbf16> to vector<1x1x8x8xbf16>
    tpu.vector_store %arg11[%c0_57, %c3, %c0_58, %c0_59], %67 {strides = array<i32>} : memref<1x4x8x8xbf16, #tpu.memory_space<vmem>>, vector<1x1x8x8xbf16>,
    %68 = vector.extract_strided_slice %26 {offsets = [0, 24], sizes = [8, 8], strides = [1, 1]} : vector<8x32xbf16> to vector<8x8xbf16>
    %c0_60 = arith.constant 0 : index
    %c3_61 = arith.constant 3 : index
    %c0_62 = arith.constant 0 : index
    %c0_63 = arith.constant 0 : index
    %69 = vector.load %arg12[%c0_60, %c3_61, %c0_62, %c0_63] : memref<1x4x8x8xbf16, #tpu.memory_space<vmem>>, vector<1x1x8x8xbf16>
    %70 = vector.shape_cast %69 : vector<1x1x8x8xbf16> to vector<8x8xbf16>
    %71 = vector.shape_cast %68 : vector<8x8xbf16> to vector<1x1x8x8xbf16>
    tpu.vector_store %arg12[%c0_60, %c3_61, %c0_62, %c0_63], %71 {strides = array<i32>} : memref<1x4x8x8xbf16, #tpu.memory_space<vmem>>, vector<1x1x8x8xbf16>,
    %72 = vector.extract_strided_slice %27 {offsets = [0, 24], sizes = [8, 8], strides = [1, 1]} : vector<8x32xbf16> to vector<8x8xbf16>
    %c0_64 = arith.constant 0 : index
    %c3_65 = arith.constant 3 : index
    %c0_66 = arith.constant 0 : index
    %c0_67 = arith.constant 0 : index
    %73 = vector.load %arg13[%c0_64, %c3_65, %c0_66, %c0_67] : memref<1x4x8x8xbf16, #tpu.memory_space<vmem>>, vector<1x1x8x8xbf16>
    %74 = vector.shape_cast %73 : vector<1x1x8x8xbf16> to vector<8x8xbf16>
    %75 = vector.shape_cast %72 : vector<8x8xbf16> to vector<1x1x8x8xbf16>
    tpu.vector_store %arg13[%c0_64, %c3_65, %c0_66, %c0_67], %75 {strides = array<i32>} : memref<1x4x8x8xbf16, #tpu.memory_space<vmem>>, vector<1x1x8x8xbf16>,
    return
  }
  func.func @transform_0(%arg0: i32, %arg1: i32) -> (i32, i32, i32) {
    %c0_i32 = arith.constant 0 : i32
    %c0_i32_0 = arith.constant 0 : i32
    return %arg0, %arg1, %c0_i32 : i32, i32, i32
  }
  func.func @transform_1(%arg0: i32, %arg1: i32) -> (i32, i32) {
    %c0_i32 = arith.constant 0 : i32
    %c0_i32_0 = arith.constant 0 : i32
    %c0_i32_1 = arith.constant 0 : i32
    return %c0_i32, %c0_i32_0 : i32, i32
  }
  func.func @transform_2(%arg0: i32, %arg1: i32) -> (i32, i32) {
    %c0_i32 = arith.constant 0 : i32
    %c0_i32_0 = arith.constant 0 : i32
    %c0_i32_1 = arith.constant 0 : i32
    return %c0_i32, %c0_i32_0 : i32, i32
  }
  func.func @transform_3(%arg0: i32, %arg1: i32) -> (i32, i32) {
    %c0_i32 = arith.constant 0 : i32
    %c0_i32_0 = arith.constant 0 : i32
    %c0_i32_1 = arith.constant 0 : i32
    return %c0_i32, %c0_i32_0 : i32, i32
  }
  func.func @transform_4(%arg0: i32, %arg1: i32) -> (i32, i32) {
    %c0_i32 = arith.constant 0 : i32
    %c0_i32_0 = arith.constant 0 : i32
    %c0_i32_1 = arith.constant 0 : i32
    return %c0_i32, %c0_i32_0 : i32, i32
  }
  func.func @transform_5(%arg0: i32, %arg1: i32) -> (i32, i32) {
    %c0_i32 = arith.constant 0 : i32
    %c0_i32_0 = arith.constant 0 : i32
    %c0_i32_1 = arith.constant 0 : i32
    return %c0_i32, %c0_i32_0 : i32, i32
  }
  func.func @transform_6(%arg0: i32, %arg1: i32) -> (i32, i32) {
    %c0_i32 = arith.constant 0 : i32
    %c0_i32_0 = arith.constant 0 : i32
    %c0_i32_1 = arith.constant 0 : i32
    return %c0_i32, %c0_i32_0 : i32, i32
  }
  func.func @transform_7(%arg0: i32, %arg1: i32) -> (i32, i32, i32) {
    %c0_i32 = arith.constant 0 : i32
    %c0_i32_0 = arith.constant 0 : i32
    return %arg0, %arg1, %c0_i32 : i32, i32, i32
  }
  func.func @transform_8(%arg0: i32, %arg1: i32) -> (i32, i32, i32) {
    %c0_i32 = arith.constant 0 : i32
    %c0_i32_0 = arith.constant 0 : i32
    return %arg0, %arg1, %c0_i32 : i32, i32, i32
  }
  func.func @transform_9(%arg0: i32, %arg1: i32) -> (i32, i32, i32, i32) {
    %c0_i32 = arith.constant 0 : i32
    %c0_i32_0 = arith.constant 0 : i32
    %c0_i32_1 = arith.constant 0 : i32
    return %arg0, %c0_i32, %arg1, %c0_i32_0 : i32, i32, i32, i32
  }
  func.func @transform_10(%arg0: i32, %arg1: i32) -> (i32, i32, i32, i32) {
    %c0_i32 = arith.constant 0 : i32
    %c0_i32_0 = arith.constant 0 : i32
    %c0_i32_1 = arith.constant 0 : i32
    return %arg0, %c0_i32, %arg1, %c0_i32_0 : i32, i32, i32, i32
  }
  func.func @transform_11(%arg0: i32, %arg1: i32) -> (i32, i32, i32, i32) {
    %c0_i32 = arith.constant 0 : i32
    %c0_i32_0 = arith.constant 0 : i32
    %c0_i32_1 = arith.constant 0 : i32
    return %arg0, %c0_i32, %arg1, %c0_i32_0 : i32, i32, i32, i32
  }
}

</mosaic_0001>

<bundles_post_ra>
// kernel: tpu_custom_call.1
= control target key start
LH: loop header
LB: loop body
LE: loop exit
PB: predicated region body
PF: predicated region fallthrough
CT: control target
= control target key end

     0   :  { %s2138_s0 = inlined_call_operand.hbm [shape: bf16[2,8,32], index: 0, kind: input, shape index: {}]   ;;  %s2139_s1 = inlined_call_operand.hbm [shape: bf16[32,32], index: 1, kind: input, shape index: {}]   ;;  %s2140_s2 = inlined_call_operand.vmem [shape: f32[1,32], index: 2, kind: input, shape index: {}]   ;;  %s2141_s3 = inlined_call_operand.hbm [shape: bf16[32,32], index: 3, kind: input, shape index: {}]   ;;  %s2142_s4 = inlined_call_operand.vmem [shape: f32[1,32], index: 4, kind: input, shape index: {}]   ;;  %s2143_s5 = inlined_call_operand.hbm [shape: bf16[32,32], index: 5, kind: input, shape index: {}]   ;;  %s2144_s6 = inlined_call_operand.vmem [shape: f32[1,32], index: 6, kind: input, shape index: {}]   ;;  %s2145_s7 = inlined_call_operand.hbm [shape: f32[2,8,32], index: 7, kind: output, shape index: {0}]   ;;  %s2146_s8 = inlined_call_operand.hbm [shape: f32[2,8,32], index: 8, kind: output, shape index: {1}]   ;;  %s2147_s9 = inlined_call_operand.hbm [shape: bf16[2,4,8,8], index: 9, kind: output, shape index: {2}]   ;;  %s2148_s10 = inlined_call_operand.hbm [shape: bf16[2,4,8,8], index: 10, kind: output, shape index: {3}]   ;;  %s2149_s11 = inlined_call_operand.hbm [shape: bf16[2,4,8,8], index: 11, kind: output, shape index: {4}]  }
   0x1   :  { %2163 = sst [smem:[#allocation26_spill]] %s2138_s0 }
   0x2   :  { %2164 = sst [smem:[#allocation27_spill]] %s2139_s1 }
   0x3   :  { %2165 = sst [smem:[#allocation28_spill]] %s2140_s2 }
   0x4   :  { %2166 = sst [smem:[#allocation29_spill]] %s2141_s3 }
   0x5   :  { %2167 = sst [smem:[#allocation30_spill]] %s2142_s4 }
   0x6   :  { %2168 = sst [smem:[#allocation31_spill]] %s2143_s5 }
   0x7   :  { %2169 = sst [smem:[#allocation32_spill]] %s2149_s11 }
   0x8   :  { %17 = vsyncpa [#allocation3], 0 }
   0x9   :  { %19 = vsyncpa [#allocation3 + $0x1], 0 }
   0xa   :  { %20 = vsyncpa [#allocation6], 0 }
   0xb   :  { %21 = vsyncpa [#allocation9], 0 }
   0xc   :  { %22 = vsyncpa [#allocation4], 0 }
   0xd   :  { %24 = vsyncpa [#allocation4 + $0x1], 0 }
   0xe   :  { %25 = vsyncpa [#allocation12], 0 }
   0xf   :  { %27 = vsyncpa [#allocation12 + $0x1], 0 }
  0x10   :  { %28 = vsyncpa [#allocation15], 0 }
  0x11   :  { %30 = vsyncpa [#allocation15 + $0x1], 0  ;;  %s1726_s17 = smov 0   ;;  %s1728_s18 = smov 0  }
  0x12   :  { %s1730_s19 = smov 0   ;;  %s1732_s20 = smov 0  }
  0x13   :  { %s1734_s21 = smov 0   ;;  %s1736_s22 = smov 0  }
  0x14 LB: > { %2170 = sst [smem:[#allocation23_spill]] %s1626_s17  ;;  %s1757_s23 = sadd.s32 4294967295, %s1646_s22   ;;  %s1646_s22 = sphi %s1736_s22, %s36_s22   ;;  %s1642_s21 = sphi %s1734_s21, %s2207_s21   ;;  %s1638_s20 = sphi %s1732_s20, %s2206_s20   ;;  %s1634_s19 = sphi %s1730_s19, %s2205_s19   ;;  %s1630_s18 = sphi %s1728_s18, %s2204_s18   ;;  %s1626_s17 = sphi %s1726_s17, %s2203_s17  }
  0x15   : > { %s2150_s24 = sadd.s32 4294967294, %s1646_s22   ;;  %p70_p0 = scmp.ne.s32.totalorder %s1630_s18, %s1626_s17 }
  0x16   : > { %p2152_p1 = scmp.eq.s32.totalorder %s1757_s23, 0  ;;  %p228_p3 = scmp.eq.s32.totalorder %s2150_s24, 1 }
  0x17   : > { %p1117_p5 = scmp.ge.s32.totalorder %s1646_s22, 1  ;;  %p347_p7 = scmp.lt.s32.totalorder %s1646_s22, 3 }
  0x18   : > { %p1768_p4 = por %p2152_p1, %p70_p0  ;;  %p1773_p6 = por %p228_p3, %p70_p0 }
  0x19   : > { %p1778_p8 = pnand %p1117_p5, %p347_p7  ;;  %s1648_s28 = smov [#allocation5]  }
  0x1a   : > { %s2171_s25 = scalar_select %p1768_p4, 1, 0 }
  0x1b   : > { %s2172_s26 = scalar_select %p1773_p6, 1, 0 }
  0x1c   : > { %s359_s29 = sshll.u32 %s1648_s28, 4  ;;  %p1236_p9 = pneg %p1778_p8  ;;  %s360_s29 = int_to_ptr.vmem [resolvable:$true] %s359_s29 }
  0x1d   : > { %2173 = sst [smem:[#allocation24_spill]] %s2172_s26  ;;  %s1649_s12 = smov [#allocation7]  }
  0x1e   : > { %p1787_p11 = pnand %p1236_p9, %p2152_p1  ;;  %s375_s13 = sshll.u32 %s1649_s12, 4  ;;  %s376_s13 = int_to_ptr.vmem [resolvable:$true] %s375_s13 }
  0x1f   : > { %s1650_s14 = smov [#allocation8]   ;;  %s1351_s16 = scalar_lea.vmem %s360_s29, 256 }
  0x20   : > { %s391_s15 = sshll.u32 %s1650_s14, 4  ;;  %p1342_p12 = pneg %p1787_p11  ;;  %s392_s15 = int_to_ptr.vmem [resolvable:$true] %s391_s15 }
  0x21   : > { %p1352_p13 = scmp.ne.s32.totalorder %s360_s29, %s1351_s16  ;;  %p1359_p5 = scmp.lt.s32.totalorder %s360_s29, %s360_s29 }
  0x22   : > { %p1360_p7 = scmp.lt.s32.totalorder %s1351_s16, %s1351_s16 }
  0x23   : > { %p1354_p0 = pnand %p1352_p13, %p1342_p12 }
  0x24   : > { %p1361_p9 = por %p1360_p7, %p1359_p5 }
  0x25   : > { %p1355_p3 = pneg %p1354_p0 }
  0x27   : > { %p1362_p10 = pnand %p1361_p9, %p1355_p3 }
  0x29   : > { %1365 = shalt.err (!%p1362_p10)
}
  0x2a   : > { %s1651_s28 = smov 64   ;;  %s1652_s12 = smov 4  }
  0x2b   : > { %s2176_s1 = sld [smem:[#allocation27_spill]]  ;;  %s1377_s26 = scalar_lea.vmem %s376_s13, 256 }
  0x2c   : > { %p1378_p1 = scmp.ne.s32.totalorder %s376_s13, %s1377_s26  ;;  %p1385_p2 = scmp.lt.s32.totalorder %s376_s13, %s376_s13 }
  0x2d   : > { %p1386_p6 = scmp.lt.s32.totalorder %s1377_s26, %s1377_s26 }
  0x2e   : > { %p1380_p13 = pnand %p1378_p1, %p1342_p12 }
  0x2f   : > { %p1387_p5 = por %p1386_p6, %p1385_p2 }
  0x30   : > { %p1381_p0 = pneg %p1380_p13 }
  0x31   : > { %1239 = dma.hbm_to_vmem [thread:$0]  (!%p1787_p11), %s2176_s1, 256, %s360_s29, [#allocation6], %s1651_s28, %s1651_s28, %s1652_s12  }
  0x32   : > { %p1388_p3 = pnand %p1387_p5, %p1381_p0 }
  0x34   : > { %1391 = shalt.err (!%p1388_p3)
}
  0x35   : > { %s2177_s3 = sld [smem:[#allocation29_spill]]  ;;  %s1403_s24 = scalar_lea.vmem %s392_s15, 256 }
  0x36   : > { %p1404_p10 = scmp.ne.s32.totalorder %s392_s15, %s1403_s24  ;;  %p1411_p9 = scmp.lt.s32.totalorder %s392_s15, %s392_s15 }
  0x37   : > { %p1412_p13 = scmp.lt.s32.totalorder %s1403_s24, %s1403_s24 }
  0x38   : > { %p1406_p7 = pnand %p1404_p10, %p1342_p12 }
  0x39   : > { %p1413_p4 = por %p1412_p13, %p1411_p9 }
  0x3a   : > { %p1407_p1 = pneg %p1406_p7 }
  0x3b   : > { %1242 = dma.hbm_to_vmem [thread:$0]  (!%p1787_p11), %s2177_s3, 256, %s376_s13, [#allocation6], %s1651_s28, %s1651_s28, %s1652_s12  }
  0x3c   : > { %p1414_p2 = pnand %p1413_p4, %p1407_p1 }
  0x3e   : > { %1417 = shalt.err (!%p1414_p2)
}
  0x3f   : > { %s2178_s5 = sld [smem:[#allocation31_spill]]  ;;  %s57_s17 = sadd.s32 1, %s1634_s19 }
  0x40   : > { %s48_s13 = sadd.s32 1, %s1642_s21  ;;  %p64_p4 = scmp.ne.s32.totalorder %s1634_s19, %s1630_s18 }
  0x41   : > { %p50_p6 = scmp.ge.s32.totalorder %s48_s13, 2  ;;  %p65_p12 = scmp.eq.s32.totalorder %s1646_s22, 0 }
  0x42   : > { %p2179_p0 = scmp.eq.s32.totalorder %s1757_s23, 1  ;;  %p1269_p3 = scmp.lt.s32.totalorder %s1646_s22, 2 }
  0x43   : > { %s2209_s13 = smov (%p50_p6, %s48_s13), 0  ;;  %p66_p10 = por %p65_p12, %p64_p4 }
  0x44   : > { %p1824_p5 = por %p2179_p0, %p64_p4  ;;  %2181 = sst [smem:[#allocation25_spill]] %s2209_s13 }
  0x45   : > { %1245 = dma.hbm_to_vmem [thread:$0]  (!%p1787_p11), %s2178_s5, 256, %s392_s15, [#allocation9], %s1651_s28, %s1651_s28, %s1652_s12  }
  0x46   : > { %s408_s14 = sand.u32 1, %s1634_s19   ;;  %s52_s16 = ssub.s32 %s1642_s21, %s2209_s13 }
  0x47   : > { %p55_p7 = scmp.eq.s32.totalorder %s52_s16, 0  ;;  %s1122_s15 = sshll.u32 %s408_s14, 2 }
  0x48   : > { %s1123_s28 = sshll.u32 %s1642_s21, 6  ;;  %s2182_s0 = sld [smem:[#allocation26_spill]] }
  0x49   : > { %s1836_s12 = scalar_select %p55_p7, %s1634_s19, %s57_s17  }
  0x4a   : > { %s412_s1 = scalar_lea.vmem [#allocation2], %s1122_s15  ;;  %p1843_p11 = pnand %p1269_p3, %p66_p10 }
  0x4b   : > { %s420_s3 = sshll.u32 %s412_s1, 4  ;;  %s409_s11 = scalar_lea.sflag [#allocation3], %s408_s14  ;;  %s421_s3 = int_to_ptr.vmem [resolvable:$true] %s420_s3 }
  0x4c   : > { %p1420_p1 = pneg %p1843_p11  ;;  %s1431_s16 = scalar_lea.vmem %s421_s3, 64 }
  0x4d   : > { %p1432_p9 = scmp.ne.s32.totalorder %s421_s3, %s1431_s16  ;;  %s1653_s17 = smov [#allocation2]  }
  0x4e   : > { %s418_s29 = scalar_lea.hbm %s2182_s0, %s1123_s28  ;;  %s1436_s13 = sshll.u32 %s1653_s17, 4  ;;  %s1437_s13 = int_to_ptr.vmem [resolvable:$false] %s1436_s13 }
  0x4f   : > { %p1434_p13 = pnand %p1432_p9, %p1420_p1  ;;  %s1438_s28 = scalar_lea.vmem %s1437_s13, 128 }
  0x50   : > { %p1439_p4 = scmp.lt.s32.totalorder %s421_s3, %s1437_s13  ;;  %p1440_p6 = scmp.lt.s32.totalorder %s1438_s28, %s1431_s16 }
  0x51   : > { %p1435_p2 = pneg %p1434_p13 }
  0x52   : > { %p1441_p12 = por %p1440_p6, %p1439_p4 }
  0x54   : > { %p1442_p0 = pnand %p1441_p12, %p1435_p2 }
  0x56   : > { %1445 = shalt.err (!%p1442_p0)
}
  0x57   : > { %1249 = dma.hbm_to_vmem [thread:$0]  (!%p1843_p11), %s418_s29, 64, %s421_s3, %s409_s11  }
  0x58   : > { %429 = sbr.rel (%p1778_p8) target bundleno = 496 (0x1f0), region = 48  ;;  %s1854_s1 = sand.u32 (!%p1778_p8), 1, %s1630_s18  }
  0x59   : > { %s1125_s14 = sshll.u32 (!%p1778_p8), %s1854_s1, 2  ;;  %s432_s15 = scalar_lea.sflag (!%p1778_p8), [#allocation3], %s1854_s1 }
  0x5a   : > { %s435_s24 = scalar_lea.vmem (!%p1778_p8), [#allocation2], %s1125_s14  ;;  %p2184_p3 = scmp.ne.s32.totalorder (!%p1778_p8), %s2171_s25, 0 }
  0x5d   : > { %1601 = dma.done.wait (%p2184_p3), %s432_s15, 64  }
  0x5e   : > { %1603 = vsyncadd (%p2184_p3), %s432_s15, 4294967232  ;;  %p2185_p10 = scmp.eq.s32.totalorder %s1757_s23, 0 }
  0x60   : > { %1605 = dma.done.wait (%p2185_p10), [#allocation6], 512   ;;  %p2186_p7 = pmov %p2185_p10 }
  0x62   : > { %1607 = vsyncadd (%p2186_p7), [#allocation6], 4294966784  ;;  %p2187_p8 = pmov %p2186_p7 }
  0x63   : > { %p2188_p11 = pmov %p2186_p7 }
  0x64   : > { %1609 = dma.done.wait (%p2187_p8), [#allocation9], 256  }
  0x65   : > { %1611 = vsyncadd (%p2188_p11), [#allocation9], 4294967040  ;;  %v1654_v0 = vmov 0.0   ;;  %vm1655_vm0 = vmmov 0   ;;  %vm529_vm1 = vcmask 261120   ;;  %v1334_v1 = vld [vmem:[#allocation5 + $0x8] sm:$0xff]  }
  0x66   : > { %1188 = vmatprep.subr.bf16.mxu0 %v1654_v0  ;;  %1196 = vmatprep.subr.bf16.mxu1 %v1654_v0  ;;  %v1335_v2 = vld [vmem:[#allocation7 + $0x8] sm:$0xff]   ;;  %v537_v3 = vsel %vm529_vm1, %v1334_v1, 0  ;;  %v1336_v5 = vld [vmem:[#allocation5] sm:$0xff]   ;;  %v1337_v6 = vld [vmem:[#allocation7] sm:$0xff]   ;;  %s2189_s2 = sld [smem:[#allocation28_spill]]  ;;  %s1129_s11 = sshll.u32 %s1854_s1, 3 }
  0x67   : > { %1192 = vmatprep.mubr.msk.bf16.mxu0 %vm1655_vm0, %v1654_v0  ;;  %1200 = vmatprep.mubr.msk.bf16.mxu1 %vm1655_vm0, %v1654_v0  ;;  %v605_v4 = vsel %vm529_vm1, %v1335_v2, 0  ;;  %v534_v7 = vsel %vm529_vm1, %v1336_v5, 0  ;;  %v602_v8 = vsel %vm529_vm1, %v1337_v6, 0  ;;  %v1338_v9 = vld [vmem:[#allocation8 + $0x8] sm:$0xff]   ;;  %v507_v10 = vld [vmem:[%s435_s24] sm:$0xf] }
  0x68   : > { %1189 = vmatpush3.bf16.xpose.msra.mxu0 %v537_v3  ;;  %1197 = vmatpush3.bf16.xpose.msra.mxu1 %v605_v4  ;;  %v672_v11 = vsel %vm529_vm1, %v1338_v9, 0  ;;  %v1339_v12 = vld [vmem:[#allocation8] sm:$0xff]   ;;  %s2190_s4 = sld [smem:[#allocation30_spill]]  ;;  %s1890_s13 = sshll.u32 %s1854_s1, 4  ;;  %vm719_vm2 = vcmask 60416  }
  0x69   : > { %1190 = vmatprep.subr.bf16.mxu0 %v1654_v0  ;;  %1198 = vmatprep.subr.bf16.mxu1 %v1654_v0  ;;  %v669_v13 = vsel %vm529_vm1, %v1339_v12, 0  ;;  %s1894_s26 = scalar_lea.vmem [#allocation10], %s1129_s11  ;;  %s2158_s29 = smov 104   ;;  %v1142_v29 = vld [vmem:[%s2144_s6] ss:$0 sm:$0xff] }
  0x6a   : > { %s2157_s16 = smov 120   ;;  %s1901_s17 = scalar_lea.vmem [#allocation14], %s1890_s13 }
  0x6b   : > { %s1906_s28 = scalar_lea.vmem [#allocation13], %s1890_s13  ;;  %s2161_s14 = smov 112  }
  0x6c   : > { %v1134_v14 = vld [vmem:[%s2189_s2] ss:$0 sm:$0xff]  ;;  %s2160_s3 = sand.u32 1, %s1757_s23   ;;  %s2162_s5 = sshll.u32 %s1638_s20, 7 }
  0x6d   : > { %s2191_s2 = smov 104   ;;  %s1933_s15 = scalar_lea.sflag [#allocation12], %s2160_s3 }
  0x6e   : > { %v1138_v15 = vld [vmem:[%s2190_s4] ss:$0 sm:$0xff] }
  0x70   : > { %1191 = vmatpush3.bf16.xpose.msra.mxu0 %v534_v7  ;;  %1199 = vmatpush3.bf16.xpose.msra.mxu1 %v602_v8 }
  0x71   : > { %1204 = vmatprep.subr.bf16.mxu0 %v1654_v0 }
  0x77   : > { %1193 = vmatmul.mubr.msk.bf16.vlgmr.msra.gmra.mxu0 %vm529_vm1, %v507_v10  ;;  %1201 = vmatmul.mubr.msk.bf16.vlgmr.msra.gmra.mxu1 %vm529_vm1, %v507_v10 }
  0x78   : > { %1205 = vmatpush3.bf16.xpose.msra.mxu0 %v672_v11  ;;  %1208 = vmatprep.mubr.msk.bf16.mxu0 %vm1655_vm0, %v1654_v0 }
  0x79   : > { %1206 = vmatprep.subr.bf16.mxu0 %v1654_v0 }
  0x80   : > { %1207 = vmatpush3.bf16.xpose.msra.mxu0 %v669_v13 }
  0x87   : > { %1209 = vmatmul.mubr.msk.bf16.vlgmr.msra.gmra.mxu0 %vm529_vm1, %v507_v10 }
 0x137   : > { %v573_v16 = vpop.f32.mrf.mxu0  ;;  %v641_v18 = vpop.f32.mrf.mxu1 }
 0x138   : > { %v574_v17 = vadd.f32 %v1134_v14, %v573_v16  ;;  %v642_v19 = vadd.f32 %v1138_v15, %v641_v18 }
 0x139   : > { %v1194_v20 = vpop.f32.mrf.mxu0  ;;  %v1202_v22 = vpop.f32.mrf.mxu1 }
 0x13a   : > { %v579_v21 = vmul.f32 0.35355338, %v574_v17  ;;  %v717_v23 = vpack.c.bf16 %v642_v19, %v642_v19  ;;  %714 = vst.msk [vmem:[%s1894_s26] sm:$0xff] %vm529_vm1, %v642_v19 }
 0x13b   : > { %v576_v24 = vpop.f32.mrf.mxu0  ;;  %v644_v26 = vpop.f32.mrf.mxu1 }
 0x13c   : > { %v716_v25 = vpack.c.bf16 %v579_v21, %v579_v21  ;;  %767 = vrot.lane.b32.xlu1 %v717_v23, %s2158_s29  ;;  %734 = vrot.lane.b32.xlu0 %v717_v23, %s2157_s16  ;;  %721 = vst.msk [vmem:[%s1901_s17] sm:$0xf] %vm719_vm2, %v717_v23  ;;  %s484_s29 = scalar_lea.vmem [#allocation11], %s1129_s11  ;;  %s1659_s11 = smov [#allocation11]  }
 0x13d   : > { %v1195_v27 = vpop.f32.mrf.mxu0  ;;  %v1203_v28 = vpop.f32.mrf.mxu1  ;;  %s826_s0 = sshll.u32 %s484_s29, 4  ;;  %s1450_s25 = sshll.u32 %s1659_s11, 4  ;;  %s1928_s0 = int_to_ptr.vmem [resolvable:$true] %s826_s0  ;;  %s1451_s25 = int_to_ptr.vmem [resolvable:$false] %s1450_s25 }
 0x13e   : > { %720 = vst.msk [vmem:[%s1906_s28] sm:$0xf] %vm719_vm2, %v716_v25  ;;  %s1446_s24 = scalar_lea.vmem %s1928_s0, 128  ;;  %s1452_s27 = scalar_lea.vmem %s1451_s25, 256 }
 0x13f   : > { %p1447_p1 = scmp.ne.s32.totalorder %s1928_s0, %s1446_s24  ;;  %p1453_p2 = scmp.lt.s32.totalorder %s1928_s0, %s1451_s25 }
 0x140   : > { %726 = vrot.lane.b32.xlu1 %v716_v25, %s2157_s16  ;;  %752 = vrot.lane.b32.xlu0 %v717_v23, %s2161_s14  ;;  %s1923_s16 = scalar_lea.hbm %s2146_s8, %s2162_s5  ;;  %p1454_p4 = scmp.lt.s32.totalorder %s1452_s27, %s1446_s24 }
 0x141   : > { %p1448_p9 = pnand %p1447_p1, %p1824_p5 }
 0x142   : > { %p1455_p6 = por %p1454_p4, %p1453_p2 }
 0x143   : > { %p1449_p13 = pneg %p1448_p9 }
 0x144   : > { %747 = vrot.lane.b32.xlu1 %v716_v25, %s2161_s14 }
 0x145   : > { %p1456_p12 = pnand %p1455_p6, %p1449_p13 }
 0x147   : > { %v708_v30 = vpop.f32.mrf.mxu0 }
 0x148   : > { %v709_v31 = vadd.f32 %v1142_v29, %v708_v30  ;;  %762 = vrot.lane.b32.xlu1 %v716_v25, %s2191_s2 }
 0x149   : > { %v1210_v32 = vpop.f32.mrf.mxu0 }
 0x14a   : > { %v718_v33 = vpack.c.bf16 %v709_v31, %v709_v31  ;;  %715 = vst.msk [vmem:[%s484_s29] sm:$0xff] %vm529_vm1, %v709_v31 }
 0x14b   : > { %v711_v34 = vpop.f32.mrf.mxu0 }
 0x14c   : > { %1459 = shalt.err (!%p1456_p12)
}
 0x14d   : > { %s1460_s29 = scalar_lea.hbm %s1923_s16, 128  ;;  %s1464_s11 = scalar_lea.hbm %s2146_s8, 256 }
 0x14e   : > { %p1461_p0 = scmp.ne.s32.totalorder %s1923_s16, %s1460_s29  ;;  %p1465_p7 = scmp.lt.s32.totalorder %s1923_s16, %s2146_s8 }
 0x14f   : > { %p1466_p8 = scmp.lt.s32.totalorder %s1464_s11, %s1460_s29 }
 0x150   : > { %p1462_p3 = pnand %p1461_p0, %p1824_p5 }
 0x151   : > { %p1467_p11 = por %p1466_p8, %p1465_p7 }
 0x152   : > { %p1463_p10 = pneg %p1462_p3 }
 0x154   : > { %p1468_p1 = pnand %p1467_p11, %p1463_p10 }
 0x156   : > { %1471 = shalt.err (!%p1468_p1)
}
 0x157   : > { %1227 = dma.vmem_to_hbm [thread:$0]  (%p1824_p5), %s1928_s0, 128, %s1923_s16, %s1933_s15   ;;  %v1211_v35 = vpop.f32.mrf.mxu0 }
 0x158   : > { %s2192_s14 = smov 120   ;;  %s1958_s3 = scalar_lea.vmem [#allocation16], %s1890_s13 }
 0x159   : > { %742 = vrot.lane.b32.xlu0 %v718_v33, %s2192_s14  ;;  %722 = vst.msk [vmem:[%s1958_s3] sm:$0xf] %vm719_vm2, %v718_v33  ;;  %s2193_s4 = sshll.u32 %s1638_s20, 7  ;;  %s812_s27 = sshll.u32 %s1894_s26, 4  ;;  %s813_s27 = int_to_ptr.vmem [resolvable:$true] %s812_s27 }
 0x15a   : > { %s1967_s25 = scalar_lea.hbm %s2145_s7, %s2193_s4  ;;  %s2194_s29 = smov 112  }
 0x15b   : > { %s778_s11 = scalar_lea.sflag [#allocation4], %s1854_s1  ;;  %s1472_s0 = scalar_lea.vmem %s813_s27, 128 }
 0x15c   : > { %p1473_p9 = scmp.ne.s32.totalorder %s813_s27, %s1472_s0  ;;  %s1660_s13 = smov [#allocation10]  }
 0x15d   : > { %757 = vrot.lane.b32.xlu0 %v718_v33, %s2194_s29  ;;  %s1476_s16 = sshll.u32 %s1660_s13, 4  ;;  %s1477_s16 = int_to_ptr.vmem [resolvable:$false] %s1476_s16 }
 0x15e   : > { %p1474_p13 = pnand %p1473_p9, %p1824_p5  ;;  %s1478_s14 = scalar_lea.vmem %s1477_s16, 256 }
 0x15f   : > { %p1479_p4 = scmp.lt.s32.totalorder %s813_s27, %s1477_s16  ;;  %p1480_p6 = scmp.lt.s32.totalorder %s1478_s14, %s1472_s0 }
 0x160   : > { %p1475_p2 = pneg %p1474_p13 }
 0x161   : > { %p1481_p12 = por %p1480_p6, %p1479_p4 }
 0x163   : > { %p1482_p0 = pnand %p1481_p12, %p1475_p2 }
 0x165   : > { %1485 = shalt.err (!%p1482_p0)
}
 0x166   : > { %s1486_s26 = scalar_lea.hbm %s1967_s25, 128  ;;  %s1490_s5 = scalar_lea.hbm %s2145_s7, 256 }
 0x167   : > { %p1487_p3 = scmp.ne.s32.totalorder %s1967_s25, %s1486_s26  ;;  %p1491_p8 = scmp.lt.s32.totalorder %s1967_s25, %s2145_s7 }
 0x168   : > { %p1492_p11 = scmp.lt.s32.totalorder %s1490_s5, %s1486_s26 }
 0x169   : > { %p1488_p10 = pnand %p1487_p3, %p1824_p5 }
 0x16a   : > { %p1493_p1 = por %p1492_p11, %p1491_p8 }
 0x16b   : > { %p1489_p7 = pneg %p1488_p10 }
 0x16d   : > { %p1494_p9 = pnand %p1493_p1, %p1489_p7 }
 0x16f   : > { %1497 = shalt.err (!%p1494_p9)
}
 0x170   : > { %1226 = dma.vmem_to_hbm [thread:$0]  (%p1824_p5), %s813_s27, 128, %s1967_s25, %s778_s11   ;;  %772 = vrot.lane.b32.xlu0 %v718_v33, %s2191_s2 }
 0x171   : > { %s857_s0 = sshll.u32 %s1901_s17, 4  ;;  %s1991_s13 = sshll.u32 %s1638_s20, 8  ;;  %s1993_s0 = int_to_ptr.vmem [resolvable:$true] %s857_s0 }
 0x172   : > { %s2003_s2 = scalar_lea.hbm %s2148_s10, %s1991_s13  ;;  %s2195_s20 = sand.u32 1, %s1757_s23  }
 0x173   : > { %s2011_s27 = scalar_lea.sflag [#allocation15], %s2195_s20  ;;  %s1498_s11 = scalar_lea.vmem %s1993_s0, 256 }
 0x174   : > { %p1499_p13 = scmp.ne.s32.totalorder %s1993_s0, %s1498_s11  ;;  %s1661_s14 = smov [#allocation14]  }
 0x175   : > { %s1502_s26 = sshll.u32 %s1661_s14, 4  ;;  %s1503_s26 = int_to_ptr.vmem [resolvable:$false] %s1502_s26 }
 0x176   : > { %p1500_p2 = pnand %p1499_p13, %p1824_p5  ;;  %s1504_s1 = scalar_lea.vmem %s1503_s26, 512 }
 0x177   : > { %p1505_p6 = scmp.lt.s32.totalorder %s1993_s0, %s1503_s26  ;;  %p1506_p12 = scmp.lt.s32.totalorder %s1504_s1, %s1498_s11 }
 0x178   : > { %p1501_p4 = pneg %p1500_p2 }
 0x179   : > { %p1507_p0 = por %p1506_p12, %p1505_p6 }
 0x17b   : > { %p1508_p3 = pnand %p1507_p0, %p1501_p4 }
 0x1ae   : > { %v768_v36 = vpop.permute.xlu1 %767  ;;  %v735_v37 = vpop.permute.xlu0 %734 }
 0x1af   : > { %1156 = vst.msk [vmem:[%s1901_s17 + $0xc] sm:$0xf] %vm719_vm2, %v768_v36  ;;  %1149 = vst.msk [vmem:[%s1901_s17 + $0x4] sm:$0xf] %vm719_vm2, %v735_v37 }
 0x1b2   : > { %v727_v38 = vpop.permute.xlu1 %726  ;;  %v753_v39 = vpop.permute.xlu0 %752 }
 0x1b3   : > { %1147 = vst.msk [vmem:[%s1906_s28 + $0x4] sm:$0xf] %vm719_vm2, %v727_v38  ;;  %1153 = vst.msk [vmem:[%s1901_s17 + $0x8] sm:$0xf] %vm719_vm2, %v753_v39 }
 0x1b4   : > { %1511 = shalt.err (!%p1508_p3)
}
 0x1b5   : > { %s1512_s23 = scalar_lea.hbm %s2003_s2, 256  ;;  %s1516_s5 = scalar_lea.hbm %s2148_s10, 512 }
 0x1b6   : > { %p1513_p10 = scmp.ne.s32.totalorder %s2003_s2, %s1512_s23  ;;  %p1517_p11 = scmp.lt.s32.totalorder %s2003_s2, %s2148_s10 }
 0x1b7   : > { %p1518_p1 = scmp.lt.s32.totalorder %s1516_s5, %s1512_s23 }
 0x1b8   : > { %p1514_p7 = pnand %p1513_p10, %p1824_p5 }
 0x1b9   : > { %p1519_p9 = por %p1518_p1, %p1517_p11 }
 0x1ba   : > { %p1515_p8 = pneg %p1514_p7 }
 0x1bc   : > { %p1520_p13 = pnand %p1519_p9, %p1515_p8 }
 0x1be   : > { %1523 = shalt.err (!%p1520_p13)
}
 0x1bf   : > { %s1662_s16 = smov 64   ;;  %s1663_s25 = smov 4   ;;  %v748_v40 = vpop.permute.xlu1 %747 }
 0x1c0   : > { %1229 = dma.vmem_to_hbm [thread:$0]  (%p1824_p5), %s1993_s0, 256, %s2003_s2, %s2011_s27, %s1662_s16, %s1662_s16, %s1663_s25  }
 0x1c1   : > { %s840_s20 = sshll.u32 %s1906_s28, 4  ;;  %1152 = vst.msk [vmem:[%s1906_s28 + $0x8] sm:$0xf] %vm719_vm2, %v748_v40  ;;  %s2046_s26 = scalar_lea.hbm %s2147_s9, %s1991_s13  ;;  %s2040_s20 = int_to_ptr.vmem [resolvable:$true] %s840_s20 }
 0x1c2   : > { %s1524_s1 = scalar_lea.vmem %s2040_s20, 256  ;;  %s1664_s0 = smov [#allocation13]  }
 0x1c3   : > { %v763_v41 = vpop.permute.xlu1 %762  ;;  %p1525_p2 = scmp.ne.s32.totalorder %s2040_s20, %s1524_s1  ;;  %s1528_s2 = sshll.u32 %s1664_s0, 4  ;;  %s1529_s2 = int_to_ptr.vmem [resolvable:$false] %s1528_s2 }
 0x1c4   : > { %1155 = vst.msk [vmem:[%s1906_s28 + $0xc] sm:$0xf] %vm719_vm2, %v763_v41  ;;  %s1530_s23 = scalar_lea.vmem %s1529_s2, 512  ;;  %p1531_p12 = scmp.lt.s32.totalorder %s2040_s20, %s1529_s2 }
 0x1c5   : > { %p1526_p4 = pnand %p1525_p2, %p1824_p5  ;;  %p1532_p0 = scmp.lt.s32.totalorder %s1530_s23, %s1524_s1 }
 0x1c7   : > { %p1527_p6 = pneg %p1526_p4  ;;  %p1533_p3 = por %p1532_p0, %p1531_p12 }
 0x1c9   : > { %p1534_p10 = pnand %p1533_p3, %p1527_p6 }
 0x1cb   : > { %1537 = shalt.err (!%p1534_p10)
}
 0x1cc   : > { %s1538_s17 = scalar_lea.hbm %s2046_s26, 256  ;;  %s1542_s5 = scalar_lea.hbm %s2147_s9, 512 }
 0x1cd   : > { %p1539_p7 = scmp.ne.s32.totalorder %s2046_s26, %s1538_s17  ;;  %p1543_p1 = scmp.lt.s32.totalorder %s2046_s26, %s2147_s9 }
 0x1ce   : > { %p1544_p9 = scmp.lt.s32.totalorder %s1542_s5, %s1538_s17 }
 0x1cf   : > { %p1540_p8 = pnand %p1539_p7, %p1824_p5 }
 0x1d0   : > { %p1545_p13 = por %p1544_p9, %p1543_p1 }
 0x1d1   : > { %p1541_p11 = pneg %p1540_p8 }
 0x1d3   : > { %p1546_p2 = pnand %p1545_p13, %p1541_p11 }
 0x1d5   : > { %1549 = shalt.err (!%p1546_p2)
}
 0x1d6   : > { %1228 = dma.vmem_to_hbm [thread:$0]  (%p1824_p5), %s2040_s20, 256, %s2046_s26, %s1933_s15, %s1662_s16, %s1662_s16, %s1663_s25   ;;  %v743_v42 = vpop.permute.xlu0 %742 }
 0x1d7   : > { %1151 = vst.msk [vmem:[%s1958_s3 + $0x4] sm:$0xf] %vm719_vm2, %v743_v42  ;;  %s874_s11 = sshll.u32 %s1958_s3, 4  ;;  %s2196_s0 = sld [smem:[#allocation32_spill]]  ;;  %s2079_s11 = int_to_ptr.vmem [resolvable:$true] %s874_s11 }
 0x1d8   : > { %s1550_s15 = scalar_lea.vmem %s2079_s11, 256  ;;  %s1665_s20 = smov [#allocation16]  }
 0x1d9   : > { %p1551_p4 = scmp.ne.s32.totalorder %s2079_s11, %s1550_s15  ;;  %s1554_s26 = sshll.u32 %s1665_s20, 4  ;;  %s1555_s26 = int_to_ptr.vmem [resolvable:$false] %s1554_s26 }
 0x1da   : > { %v758_v43 = vpop.permute.xlu0 %757  ;;  %s1556_s23 = scalar_lea.vmem %s1555_s26, 512  ;;  %p1557_p0 = scmp.lt.s32.totalorder %s2079_s11, %s1555_s26 }
 0x1db   : > { %1154 = vst.msk [vmem:[%s1958_s3 + $0x8] sm:$0xf] %vm719_vm2, %v758_v43  ;;  %p1552_p6 = pnand %p1551_p4, %p1824_p5  ;;  %p1558_p3 = scmp.lt.s32.totalorder %s1556_s23, %s1550_s15 }
 0x1dd   : > { %s2085_s2 = scalar_lea.hbm %s2196_s0, %s1991_s13  ;;  %p1553_p12 = pneg %p1552_p6 }
 0x1de   : > { %p1559_p10 = por %p1558_p3, %p1557_p0 }
 0x1e0   : > { %p1560_p7 = pnand %p1559_p10, %p1553_p12 }
 0x1e2   : > { %v773_v44 = vpop.permute.xlu0 %772 }
 0x1e3   : > { %1157 = vst.msk [vmem:[%s1958_s3 + $0xc] sm:$0xf] %vm719_vm2, %v773_v44 }
 0x1e4   : > { %1563 = shalt.err (!%p1560_p7)
}
 0x1e5   : > { %s1564_s13 = scalar_lea.hbm %s2085_s2, 256  ;;  %s1568_s28 = scalar_lea.hbm %s2196_s0, 512 }
 0x1e6   : > { %p1565_p8 = scmp.ne.s32.totalorder %s2085_s2, %s1564_s13  ;;  %p1569_p9 = scmp.lt.s32.totalorder %s2085_s2, %s2196_s0 }
 0x1e7   : > { %p1570_p13 = scmp.lt.s32.totalorder %s1568_s28, %s1564_s13 }
 0x1e8   : > { %p1566_p11 = pnand %p1565_p8, %p1824_p5 }
 0x1e9   : > { %p1571_p2 = por %p1570_p13, %p1569_p9 }
 0x1ea   : > { %p1567_p1 = pneg %p1566_p11 }
 0x1ec   : > { %p1572_p4 = pnand %p1571_p2, %p1567_p1 }
 0x1ee   : > { %1575 = shalt.err (!%p1572_p4)
}
 0x1ef   : > { %1230 = dma.vmem_to_hbm [thread:$0]  (%p1824_p5), %s2079_s11, 256, %s2085_s2, %s2011_s27, %s1662_s16, %s1662_s16, %s1663_s25  }
 0x1f0 PF: > { %s2197_s24 = sld [smem:[#allocation23_spill]]  ;;  %p2200_p12 = scmp.ge.s32.totalorder %s1646_s22, 2 }
 0x1f1   : > { %s2198_s29 = sld [smem:[#allocation24_spill]] }
 0x1f6   : > { %s889_s14 = sand.u32 1, %s2197_s24  }
 0x1f7   : > { %p2199_p6 = scmp.ne.s32.totalorder %s2198_s29, 0  ;;  %s890_s1 = scalar_lea.sflag [#allocation4], %s889_s14 }
 0x1f9   : > { %p1251_p0 = pnand %p2200_p12, %p2199_p6 }
 0x1fb   : > { %p1252_p3 = pneg %p1251_p0 }
 0x1fd   : > { %1613 = dma.done.wait (%p1252_p3), %s890_s1, 128  }
 0x1fe   : > { %1615 = vsyncadd (%p1252_p3), %s890_s1, 4294967168  ;;  %s2201_s30 = sadd.s32 4294967294, %s1646_s22  }
 0x1ff   : > { %s898_s15 = sand.u32 1, %s2201_s30  }
 0x200   : > { %s899_s20 = scalar_lea.sflag [#allocation12], %s898_s15 }
 0x201   : > { %1617 = dma.done.wait (%p1252_p3), %s899_s20, 384  }
 0x202   : > { %1619 = vsyncadd (%p1252_p3), %s899_s20, 4294966912  ;;  %s917_s26 = scalar_lea.sflag [#allocation15], %s898_s15 }
 0x203   : > { %1621 = dma.done.wait (%p1252_p3), %s917_s26, 512  }
 0x204   : > { %1623 = vsyncadd (%p1252_p3), %s917_s26, 4294966784  ;;  %s36_s22 = sadd.s32 1, %s1646_s22   ;;  %s2202_s27 = sld [smem:[#allocation25_spill]] }
 0x205   : > { %p33_p5 = scmp.ge.s32.totalorder %s36_s22, 4   ;;  %s2203_s17 = smov %s1630_s18 }
 0x206   : > { %s2204_s18 = smov %s1634_s19  ;;  %s2205_s19 = smov %s1836_s12 }
 0x207   : > { %s2206_s20 = smov %s1642_s21  ;;  %35 = sbr.rel (!%p33_p5) target bundleno = 20 (0x14), region = 178 }
 0x20a   : > { %s2207_s21 = smov %s2202_s27 }
 0x20c   :  { %931 = vsyncpa [#allocation3], 1 }
 0x20d   :  { %933 = vsyncpa [#allocation3 + $0x1], 1 }
 0x20e   :  { %934 = vsyncpa [#allocation6], 1 }
 0x20f   :  { %935 = vsyncpa [#allocation9], 1 }
 0x210   :  { %936 = vsyncpa [#allocation4], 1 }
 0x211   :  { %938 = vsyncpa [#allocation4 + $0x1], 1 }
 0x212   :  { %939 = vsyncpa [#allocation12], 1 }
 0x213   :  { %941 = vsyncpa [#allocation12 + $0x1], 1 }
 0x214   :  { %942 = vsyncpa [#allocation15], 1 }
 0x215   :  { %944 = vsyncpa [#allocation15 + $0x1], 1 }

</bundles_post_ra>
